<compile_context>
chip_gen: v7x
topology: tpu7x:2x2x1
jax: 0.10.0
libtpu: 0.0.40
codegen_flags: <defaults>
</compile_context>

<pallas_src>
import math

import jax
import jax.numpy as jnp
from jax import lax
from jax.experimental import pallas as pl
from jax.experimental.pallas import tpu as pltpu


def _pick_batch_block(batch, seq_len, target_rows=256):
    """Largest divisor Bb of `batch` with Bb*seq_len <= target_rows (always >= 1).

    256 rows fill one v6e/v7x MXU pass (>=128 also fine on v5e)."""
    best = 1
    for d in range(1, batch + 1):
        if batch % d == 0 and d * seq_len <= max(target_rows, seq_len):
            best = d
    return best


def _mha_kernel(num_heads, head_size, value_size, batch_block, seq_len,
                pack_lanes, approx_recip):
    """Kernel factory; all sizes are compile-time constants."""
    H, HS, V, Bb, T = num_heads, head_size, value_size, batch_block, seq_len
    R = Bb * T          # rows seen by the projection / combine matmuls
    N = H * Bb          # batched (head, batch) instances for the attention einsums

    def kernel(xs_ref, wq_ref, wk_ref, wv_ref, wc_ref, bc_ref, out_ref):
        D = xs_ref.shape[-1]
        Vout = wc_ref.shape[-1]

        x2 = xs_ref[...].reshape(R, D)          # (Bb,T,D) -> (R,D): leading-dim merge only

        # Fused all-head projections (1/sqrt(head_size) already folded into Wq).
        q = jnp.dot(x2, wq_ref[...], preferred_element_type=jnp.float32).astype(x2.dtype)
        k = jnp.dot(x2, wk_ref[...], preferred_element_type=jnp.float32).astype(x2.dtype)
        v = jnp.dot(x2, wv_ref[...], preferred_element_type=jnp.float32).astype(x2.dtype)

        # Move the head axis out of the lane dim (one-time layout step) so all later
        # matmuls are batch-leading 3D contractions handled by Mosaic — no per-head
        # Python temporaries, no lane-axis concatenate of 16-wide head outputs.
        def to_heads(a, e):
            ah = jnp.stack([a[:, h * e:(h + 1) * e] for h in range(H)], axis=0)  # (H,R,e)
            return ah.reshape(N, T, e)          # touches only leading/sublane dims

        qh = to_heads(q, HS)                    # (N, T, HS)
        kh = to_heads(k, HS)                    # (N, T, HS)
        vh = to_heads(v, V)                     # (N, T, V)

        # Scores for every (head, batch) pair in one batched contraction.
        s = jnp.einsum('nqd,nkd->nqk', qh, kh,
                       preferred_element_type=jnp.float32)            # (N, T, T) f32

        # Causal mask; diagonal always unmasked so no softmax row is all -inf.
        # TODO(synk): fold masking into flash-style causal block skipping at large T.
        row = lax.broadcasted_iota(jnp.int32, (T, T), 0)
        col = lax.broadcasted_iota(jnp.int32, (T, T), 1)
        s = jnp.where((row >= col)[None, :, :], s, -jnp.inf)

        # Softmax in f32 (VPU/EUP-friendly on all generations, incl. v5e).
        s = s - jnp.max(s, axis=-1, keepdims=True)
        ex = jnp.exp(s)
        p = ex * pl.reciprocal(jnp.sum(ex, axis=-1, keepdims=True), approx=approx_recip)

        o = jnp.einsum('nqk,nkd->nqd', p.astype(vh.dtype), vh,
                       preferred_element_type=jnp.float32)            # (N, T, V) f32

        # Combine Linear without materialising the head concatenation:
        #   out = sum_h o_h @ Wc_h^T + b   (Wc_h^T pre-arranged as wc_ref[h] in wrapper)
        o3 = o.astype(x2.dtype).reshape(H, R, V)                       # leading dims only
        c = jnp.einsum('hrv,hvo->hro', o3, wc_ref[...],
                       preferred_element_type=jnp.float32)             # (H, R, Vout)
        out = jnp.sum(c, axis=0) + bc_ref[...]                         # (R, Vout) f32

        if pack_lanes:
            # Lane-dense store: pack (T, Vout) into T*Vout lanes so the write is a
            # full-width vst instead of Vout(<128)-lane masked partial stores.
            out3 = out.reshape(Bb, T, Vout)
            packed = jnp.concatenate([out3[:, t, :] for t in range(T)], axis=-1)
            out_ref[...] = packed.astype(out_ref.dtype)                # (Bb, T*Vout)
        else:
            out_ref[...] = out.reshape(Bb, T, Vout).astype(out_ref.dtype)

    return kernel


def multi_head_attention(xs, wq, wk, wv, wc, bc, head_size, *,
                         compute_dtype=jnp.bfloat16, batch_block=None):
    """xs: (B, T, D); wq/wk: (H, HS, D); wv: (H, V, D); wc: (Vout, H*V); bc: (Vout,)."""
    B, T, D = xs.shape
    H, HS, _ = wq.shape
    Vout, Vtot = wc.shape
    V = Vtot // H

    Bb = _pick_batch_block(B, T) if batch_block is None else batch_block
    assert B % Bb == 0

    scale = 1.0 / math.sqrt(head_size)

    # Layout plumbing done ONCE in the wrapper (not per grid step):
    #   - fold the attention scale into Wq,
    #   - stack heads along the output dim, transpose to (D, H*HS)/(D, H*V),
    #   - pre-arrange the combine weight as per-head (H, V, Vout) blocks,
    #   - cast MXU operands to compute_dtype (bf16 default; f32 accumulation in-kernel).
    wq_t = (jnp.transpose(wq, (2, 0, 1)).reshape(D, H * HS) * scale).astype(compute_dtype)
    wk_t = jnp.transpose(wk, (2, 0, 1)).reshape(D, H * HS).astype(compute_dtype)
    wv_t = jnp.transpose(wv, (2, 0, 1)).reshape(D, H * V).astype(compute_dtype)
    wc_h = jnp.transpose(wc.reshape(Vout, H, V), (1, 2, 0)).astype(compute_dtype)  # (H,V,Vout)
    bc_2d = bc.reshape(1, Vout).astype(jnp.float32)
    xs_c = xs.astype(compute_dtype)

    # Lane-dense output packing when Vout < 128 and (T*Vout) lines up with 128 lanes.
    pack_lanes = (Vout % 128 != 0 and (T * Vout) % 128 == 0 and T <= 64
                  and (Bb == B or Bb % 8 == 0))

    approx_recip = (compute_dtype == jnp.bfloat16)
    kernel = _mha_kernel(H, HS, V, Bb, T, pack_lanes, approx_recip)

    if pack_lanes:
        out_shape = jax.ShapeDtypeStruct((B, T * Vout), xs.dtype)
        out_spec = pl.BlockSpec((Bb, T * Vout), lambda i: (i, 0))
    else:
        out_shape = jax.ShapeDtypeStruct((B, T, Vout), xs.dtype)
        out_spec = pl.BlockSpec((Bb, T, Vout), lambda i: (i, 0, 0))

    out = pl.pallas_call(
        kernel,
        out_shape=out_shape,
        grid_spec=pltpu.PrefetchScalarGridSpec(
            num_scalar_prefetch=0,
            grid=(B // Bb,),                                   # Bb batch rows per step
            in_specs=[
                pl.BlockSpec((Bb, T, D), lambda i: (i, 0, 0)),      # xs
                pl.BlockSpec((D, H * HS), lambda i: (0, 0)),        # Wq (scaled, stacked)
                pl.BlockSpec((D, H * HS), lambda i: (0, 0)),        # Wk
                pl.BlockSpec((D, H * V), lambda i: (0, 0)),         # Wv
                pl.BlockSpec((H, V, Vout), lambda i: (0, 0, 0)),    # Wc^T per head
                pl.BlockSpec((1, Vout), lambda i: (0, 0)),          # combine bias
            ],
            out_specs=out_spec,
        ),
        compiler_params=pltpu.CompilerParams(
            dimension_semantics=("parallel",)),                # batch tiles across TCs
    )(xs_c, wq_t, wk_t, wv_t, wc_h, bc_2d)

    return out.reshape(B, T, Vout) if pack_lanes else out


def _reference(xs, wq, wk, wv, wc, bc, head_size):
    """Pure-JAX f32 reference mirroring the PyTorch forward."""
    H = wq.shape[0]
    T = xs.shape[1]
    mask = jnp.tril(jnp.ones((T, T)))
    outs = []
    for h in range(H):
        Q = xs @ wq[h].T
        K = xs @ wk[h].T
        V = xs @ wv[h].T
        w = jnp.einsum('btk,bsk->bts', Q, K)
        w = jnp.where(mask == 0, -jnp.inf, w)
        w = jax.nn.softmax(w / math.sqrt(head_size), axis=-1)
        outs.append(jnp.einsum('bts,bsv->btv', w, V))
    cat = jnp.concatenate(outs, axis=-1)
    return cat @ wc.T + bc


if __name__ == "__main__":
    # Small shapes consistent with the module: batch=2, seq=8, input_size=32,
    # head_size=16, head_count=4, value_size=16.
    B, T, input_size = 2, 8, 32
    head_size, head_count, value_size = 16, 4, 16

    key = jax.random.PRNGKey(0)
    kx, kq, kk, kv, kc, kb = jax.random.split(key, 6)

    xs = jax.random.normal(kx, (B, T, input_size), dtype=jnp.float32)
    # Stacked per-head weights (PyTorch Linear weight layout: (out_features, in_features)).
    wq = jax.random.normal(kq, (head_count, head_size, input_size), jnp.float32) * 0.1
    wk = jax.random.normal(kk, (head_count, head_size, input_size), jnp.float32) * 0.1
    wv = jax.random.normal(kv, (head_count, value_size, input_size), jnp.float32) * 0.1
    wc = jax.random.normal(kc, (value_size, value_size * head_count), jnp.float32) * 0.1
    bc = jax.random.normal(kb, (value_size,), jnp.float32) * 0.1

    ref = _reference(xs, wq, wk, wv, wc, bc, head_size)

    # Strict correctness check: f32 MXU path (exact reciprocal).
    out_f32 = jax.block_until_ready(
        multi_head_attention(xs, wq, wk, wv, wc, bc, head_size,
                             compute_dtype=jnp.float32))
    assert out_f32.shape == (B, T, value_size)
    assert jnp.allclose(out_f32, ref, atol=1e-4, rtol=1e-4), "f32 path mismatch vs reference"

    # Default performance path: bf16 MXU operands, f32 accumulation (looser tolerance).
    out_bf16 = jax.block_until_ready(
        multi_head_attention(xs, wq, wk, wv, wc, bc, head_size))
    assert out_bf16.shape == (B, T, value_size)
    assert jnp.allclose(out_bf16, ref, atol=5e-2, rtol=5e-2), "bf16 path mismatch vs reference"

    print("KERNEL_OK")
</pallas_src>

<mosaic_0001>
module attributes {stable_mosaic.version = 11 : i64} {
  func.func @kernel(%arg0: i32, %arg1: memref<2x8x32xf32, #tpu.memory_space<vmem>>, %arg2: memref<32x64xf32, #tpu.memory_space<vmem>>, %arg3: memref<32x64xf32, #tpu.memory_space<vmem>>, %arg4: memref<32x64xf32, #tpu.memory_space<vmem>>, %arg5: memref<4x16x16xf32, #tpu.memory_space<vmem>>, %arg6: memref<1x16xf32, #tpu.memory_space<vmem>>, %arg7: memref<2x128xf32, #tpu.memory_space<vmem>>) attributes {dimension_semantics = [#tpu.dimension_semantics<parallel>], iteration_bounds = array<i64: 1>, scalar_prefetch = 0 : i64, scratch_operands = 0 : i64, tpu.core_type = #tpu.core_type<tc>, window_params = [{transform_indices = @transform_0, window_bounds = array<i64: 2, 8, 32>}, {pipeline_mode = #tpu.pipeline_mode<synchronous>, transform_indices = @transform_1, window_bounds = array<i64: 32, 64>}, {pipeline_mode = #tpu.pipeline_mode<synchronous>, transform_indices = @transform_2, window_bounds = array<i64: 32, 64>}, {pipeline_mode = #tpu.pipeline_mode<synchronous>, transform_indices = @transform_3, window_bounds = array<i64: 32, 64>}, {pipeline_mode = #tpu.pipeline_mode<synchronous>, transform_indices = @transform_4, window_bounds = array<i64: 4, 16, 16>}, {pipeline_mode = #tpu.pipeline_mode<synchronous>, transform_indices = @transform_5, window_bounds = array<i64: 1, 16>}, {transform_indices = @transform_6, window_bounds = array<i64: 2, 128>}]} {
    %c0 = arith.constant 0 : index
    %c0_0 = arith.constant 0 : index
    %c0_1 = arith.constant 0 : index
    %0 = vector.load %arg1[%c0, %c0_0, %c0_1] : memref<2x8x32xf32, #tpu.memory_space<vmem>>, vector<2x8x32xf32>
    %1 = vector.shape_cast %0 : vector<2x8x32xf32> to vector<16x32xf32>
    %c0_2 = arith.constant 0 : index
    %c0_3 = arith.constant 0 : index
    %2 = vector.load %arg2[%c0_2, %c0_3] : memref<32x64xf32, #tpu.memory_space<vmem>>, vector<32x64xf32>
    %cst = arith.constant dense<0.000000e+00> : vector<16x64xf32>
    %3 = tpu.matmul %1, %2, %cst {dimension_numbers = #tpu.dot_dimension_numbers<[1], [0], [0], [1], [0, 0, 1, 1], [], []>} : vector<16x32xf32>, vector<32x64xf32>, vector<16x64xf32> -> vector<16x64xf32>
    %c0_4 = arith.constant 0 : index
    %c0_5 = arith.constant 0 : index
    %4 = vector.load %arg3[%c0_4, %c0_5] : memref<32x64xf32, #tpu.memory_space<vmem>>, vector<32x64xf32>
    %cst_6 = arith.constant dense<0.000000e+00> : vector<16x64xf32>
    %5 = tpu.matmul %1, %4, %cst_6 {dimension_numbers = #tpu.dot_dimension_numbers<[1], [0], [0], [1], [0, 0, 1, 1], [], []>} : vector<16x32xf32>, vector<32x64xf32>, vector<16x64xf32> -> vector<16x64xf32>
    %c0_7 = arith.constant 0 : index
    %c0_8 = arith.constant 0 : index
    %6 = vector.load %arg4[%c0_7, %c0_8] : memref<32x64xf32, #tpu.memory_space<vmem>>, vector<32x64xf32>
    %cst_9 = arith.constant dense<0.000000e+00> : vector<16x64xf32>
    %7 = tpu.matmul %1, %6, %cst_9 {dimension_numbers = #tpu.dot_dimension_numbers<[1], [0], [0], [1], [0, 0, 1, 1], [], []>} : vector<16x32xf32>, vector<32x64xf32>, vector<16x64xf32> -> vector<16x64xf32>
    %8 = vector.extract_strided_slice %3 {offsets = [0, 0], sizes = [16, 16], strides = [1, 1]} : vector<16x64xf32> to vector<16x16xf32>
    %9 = vector.extract_strided_slice %3 {offsets = [0, 16], sizes = [16, 16], strides = [1, 1]} : vector<16x64xf32> to vector<16x16xf32>
    %10 = vector.extract_strided_slice %3 {offsets = [0, 32], sizes = [16, 16], strides = [1, 1]} : vector<16x64xf32> to vector<16x16xf32>
    %11 = vector.extract_strided_slice %3 {offsets = [0, 48], sizes = [16, 16], strides = [1, 1]} : vector<16x64xf32> to vector<16x16xf32>
    %12 = vector.shape_cast %8 : vector<16x16xf32> to vector<1x16x16xf32>
    %13 = vector.shape_cast %9 : vector<16x16xf32> to vector<1x16x16xf32>
    %14 = vector.shape_cast %10 : vector<16x16xf32> to vector<1x16x16xf32>
    %15 = vector.shape_cast %11 : vector<16x16xf32> to vector<1x16x16xf32>
    %16 = tpu.concatenate %12, %13, %14, %15 in 0 : vector<1x16x16xf32>, vector<1x16x16xf32>, vector<1x16x16xf32>, vector<1x16x16xf32> -> vector<4x16x16xf32>
    %17 = vector.shape_cast %16 : vector<4x16x16xf32> to vector<8x8x16xf32>
    %18 = vector.extract_strided_slice %5 {offsets = [0, 0], sizes = [16, 16], strides = [1, 1]} : vector<16x64xf32> to vector<16x16xf32>
    %19 = vector.extract_strided_slice %5 {offsets = [0, 16], sizes = [16, 16], strides = [1, 1]} : vector<16x64xf32> to vector<16x16xf32>
    %20 = vector.extract_strided_slice %5 {offsets = [0, 32], sizes = [16, 16], strides = [1, 1]} : vector<16x64xf32> to vector<16x16xf32>
    %21 = vector.extract_strided_slice %5 {offsets = [0, 48], sizes = [16, 16], strides = [1, 1]} : vector<16x64xf32> to vector<16x16xf32>
    %22 = vector.shape_cast %18 : vector<16x16xf32> to vector<1x16x16xf32>
    %23 = vector.shape_cast %19 : vector<16x16xf32> to vector<1x16x16xf32>
    %24 = vector.shape_cast %20 : vector<16x16xf32> to vector<1x16x16xf32>
    %25 = vector.shape_cast %21 : vector<16x16xf32> to vector<1x16x16xf32>
    %26 = tpu.concatenate %22, %23, %24, %25 in 0 : vector<1x16x16xf32>, vector<1x16x16xf32>, vector<1x16x16xf32>, vector<1x16x16xf32> -> vector<4x16x16xf32>
    %27 = vector.shape_cast %26 : vector<4x16x16xf32> to vector<8x8x16xf32>
    %28 = vector.extract_strided_slice %7 {offsets = [0, 0], sizes = [16, 16], strides = [1, 1]} : vector<16x64xf32> to vector<16x16xf32>
    %29 = vector.extract_strided_slice %7 {offsets = [0, 16], sizes = [16, 16], strides = [1, 1]} : vector<16x64xf32> to vector<16x16xf32>
    %30 = vector.extract_strided_slice %7 {offsets = [0, 32], sizes = [16, 16], strides = [1, 1]} : vector<16x64xf32> to vector<16x16xf32>
    %31 = vector.extract_strided_slice %7 {offsets = [0, 48], sizes = [16, 16], strides = [1, 1]} : vector<16x64xf32> to vector<16x16xf32>
    %32 = vector.shape_cast %28 : vector<16x16xf32> to vector<1x16x16xf32>
    %33 = vector.shape_cast %29 : vector<16x16xf32> to vector<1x16x16xf32>
    %34 = vector.shape_cast %30 : vector<16x16xf32> to vector<1x16x16xf32>
    %35 = vector.shape_cast %31 : vector<16x16xf32> to vector<1x16x16xf32>
    %36 = tpu.concatenate %32, %33, %34, %35 in 0 : vector<1x16x16xf32>, vector<1x16x16xf32>, vector<1x16x16xf32>, vector<1x16x16xf32> -> vector<4x16x16xf32>
    %37 = vector.shape_cast %36 : vector<4x16x16xf32> to vector<8x8x16xf32>
    "tpu.trace_start"() <{level = 10 : i32, message = "nqd,nkd->nqk"}> : () -> ()
    %cst_10 = arith.constant dense<0.000000e+00> : vector<8x8x8xf32>
    %38 = tpu.matmul %17, %27, %cst_10 {dimension_numbers = #tpu.dot_dimension_numbers<[2], [2], [1], [1], [0, 0, 0, 1, 1, 1], [0], [0]>} : vector<8x8x16xf32>, vector<8x8x16xf32>, vector<8x8x8xf32> -> vector<8x8x8xf32>
    "tpu.trace_stop"() : () -> ()
    %39 = tpu.iota {dimensions = array<i32: 0>} : vector<8x8xi32>
    %40 = tpu.iota {dimensions = array<i32: 1>} : vector<8x8xi32>
    %41 = arith.cmpi sge, %39, %40 : vector<8x8xi32>
    %42 = vector.shape_cast %41 : vector<8x8xi1> to vector<1x8x8xi1>
    %cst_11 = arith.constant 0xFF800000 : f32
    %43 = vector.shape_cast %42 : vector<1x8x8xi1> to vector<1x8x8xi1>
    %44 = vector.broadcast %43 : vector<1x8x8xi1> to vector<8x8x8xi1>
    %45 = vector.broadcast %cst_11 : f32 to vector<8x8x8xf32>
    %46 = arith.select %44, %38, %45 : vector<8x8x8xi1>, vector<8x8x8xf32>
    %cst_12 = arith.constant dense<0xFF800000> : vector<8x8xf32>
    %47 = vector.multi_reduction <maximumf>, %46, %cst_12 [2] : vector<8x8x8xf32> to vector<8x8xf32>
    %48 = vector.shape_cast %47 : vector<8x8xf32> to vector<8x8x1xf32>
    %49 = vector.broadcast %48 : vector<8x8x1xf32> to vector<8x8x8xf32>
    %50 = arith.subf %46, %49 : vector<8x8x8xf32>
    %51 = math.exp %50 : vector<8x8x8xf32>
    %cst_13 = arith.constant dense<0.000000e+00> : vector<8x8xf32>
    %52 = vector.multi_reduction <add>, %51, %cst_13 [2] : vector<8x8x8xf32> to vector<8x8xf32>
    %53 = vector.shape_cast %52 : vector<8x8xf32> to vector<8x8x1xf32>
    %54 = tpu.reciprocal %53 : vector<8x8x1xf32> -> vector<8x8x1xf32>
    %55 = vector.broadcast %54 : vector<8x8x1xf32> to vector<8x8x8xf32>
    %56 = arith.mulf %51, %55 : vector<8x8x8xf32>
    "tpu.trace_start"() <{level = 10 : i32, message = "nqk,nkd->nqd"}> : () -> ()
    %cst_14 = arith.constant dense<0.000000e+00> : vector<8x8x16xf32>
    %57 = tpu.matmul %56, %37, %cst_14 {dimension_numbers = #tpu.dot_dimension_numbers<[2], [1], [1], [2], [0, 0, 0, 1, 1, 2], [0], [0]>} : vector<8x8x8xf32>, vector<8x8x16xf32>, vector<8x8x16xf32> -> vector<8x8x16xf32>
    "tpu.trace_stop"() : () -> ()
    %58 = vector.shape_cast %57 : vector<8x8x16xf32> to vector<4x16x16xf32>
    %c0_15 = arith.constant 0 : index
    %c0_16 = arith.constant 0 : index
    %c0_17 = arith.constant 0 : index
    %59 = vector.load %arg5[%c0_15, %c0_16, %c0_17] : memref<4x16x16xf32, #tpu.memory_space<vmem>>, vector<4x16x16xf32>
    "tpu.trace_start"() <{level = 10 : i32, message = "hrv,hvo->hro"}> : () -> ()
    %cst_18 = arith.constant dense<0.000000e+00> : vector<4x16x16xf32>
    %60 = tpu.matmul %58, %59, %cst_18 {dimension_numbers = #tpu.dot_dimension_numbers<[2], [1], [1], [2], [0, 0, 0, 1, 1, 2], [0], [0]>} : vector<4x16x16xf32>, vector<4x16x16xf32>, vector<4x16x16xf32> -> vector<4x16x16xf32>
    "tpu.trace_stop"() : () -> ()
    %cst_19 = arith.constant dense<0.000000e+00> : vector<16x16xf32>
    %61 = vector.multi_reduction <add>, %60, %cst_19 [0] : vector<4x16x16xf32> to vector<16x16xf32>
    %c0_20 = arith.constant 0 : index
    %c0_21 = arith.constant 0 : index
    %62 = vector.load %arg6[%c0_20, %c0_21] : memref<1x16xf32, #tpu.memory_space<vmem>>, vector<1x16xf32>
    %63 = vector.broadcast %62 : vector<1x16xf32> to vector<16x16xf32>
    %64 = arith.addf %61, %63 : vector<16x16xf32>
    %65 = vector.shape_cast %64 : vector<16x16xf32> to vector<2x8x16xf32>
    %66 = vector.extract_strided_slice %65 {offsets = [0, 0, 0], sizes = [2, 1, 16], strides = [1, 1, 1]} : vector<2x8x16xf32> to vector<2x1x16xf32>
    %67 = vector.shape_cast %66 : vector<2x1x16xf32> to vector<2x16xf32>
    %68 = vector.extract_strided_slice %65 {offsets = [0, 1, 0], sizes = [2, 1, 16], strides = [1, 1, 1]} : vector<2x8x16xf32> to vector<2x1x16xf32>
    %69 = vector.shape_cast %68 : vector<2x1x16xf32> to vector<2x16xf32>
    %70 = vector.extract_strided_slice %65 {offsets = [0, 2, 0], sizes = [2, 1, 16], strides = [1, 1, 1]} : vector<2x8x16xf32> to vector<2x1x16xf32>
    %71 = vector.shape_cast %70 : vector<2x1x16xf32> to vector<2x16xf32>
    %72 = vector.extract_strided_slice %65 {offsets = [0, 3, 0], sizes = [2, 1, 16], strides = [1, 1, 1]} : vector<2x8x16xf32> to vector<2x1x16xf32>
    %73 = vector.shape_cast %72 : vector<2x1x16xf32> to vector<2x16xf32>
    %74 = vector.extract_strided_slice %65 {offsets = [0, 4, 0], sizes = [2, 1, 16], strides = [1, 1, 1]} : vector<2x8x16xf32> to vector<2x1x16xf32>
    %75 = vector.shape_cast %74 : vector<2x1x16xf32> to vector<2x16xf32>
    %76 = vector.extract_strided_slice %65 {offsets = [0, 5, 0], sizes = [2, 1, 16], strides = [1, 1, 1]} : vector<2x8x16xf32> to vector<2x1x16xf32>
    %77 = vector.shape_cast %76 : vector<2x1x16xf32> to vector<2x16xf32>
    %78 = vector.extract_strided_slice %65 {offsets = [0, 6, 0], sizes = [2, 1, 16], strides = [1, 1, 1]} : vector<2x8x16xf32> to vector<2x1x16xf32>
    %79 = vector.shape_cast %78 : vector<2x1x16xf32> to vector<2x16xf32>
    %80 = vector.extract_strided_slice %65 {offsets = [0, 7, 0], sizes = [2, 1, 16], strides = [1, 1, 1]} : vector<2x8x16xf32> to vector<2x1x16xf32>
    %81 = vector.shape_cast %80 : vector<2x1x16xf32> to vector<2x16xf32>
    %82 = tpu.concatenate %67, %69, %71, %73, %75, %77, %79, %81 in 1 : vector<2x16xf32>, vector<2x16xf32>, vector<2x16xf32>, vector<2x16xf32>, vector<2x16xf32>, vector<2x16xf32>, vector<2x16xf32>, vector<2x16xf32> -> vector<2x128xf32>
    %c0_22 = arith.constant 0 : index
    %c0_23 = arith.constant 0 : index
    %83 = vector.load %arg7[%c0_22, %c0_23] : memref<2x128xf32, #tpu.memory_space<vmem>>, vector<2x128xf32>
    tpu.vector_store %arg7[%c0_22, %c0_23], %82 {strides = array<i32>} : memref<2x128xf32, #tpu.memory_space<vmem>>, vector<2x128xf32>,
    return
  }
  func.func @transform_0(%arg0: i32) -> (i32, i32, i32) {
    %c0_i32 = arith.constant 0 : i32
    %c0_i32_0 = arith.constant 0 : i32
    %c0_i32_1 = arith.constant 0 : i32
    return %arg0, %c0_i32, %c0_i32_0 : i32, i32, i32
  }
  func.func @transform_1(%arg0: i32) -> (i32, i32) {
    %c0_i32 = arith.constant 0 : i32
    %c0_i32_0 = arith.constant 0 : i32
    %c0_i32_1 = arith.constant 0 : i32
    return %c0_i32, %c0_i32_0 : i32, i32
  }
  func.func @transform_2(%arg0: i32) -> (i32, i32) {
    %c0_i32 = arith.constant 0 : i32
    %c0_i32_0 = arith.constant 0 : i32
    %c0_i32_1 = arith.constant 0 : i32
    return %c0_i32, %c0_i32_0 : i32, i32
  }
  func.func @transform_3(%arg0: i32) -> (i32, i32) {
    %c0_i32 = arith.constant 0 : i32
    %c0_i32_0 = arith.constant 0 : i32
    %c0_i32_1 = arith.constant 0 : i32
    return %c0_i32, %c0_i32_0 : i32, i32
  }
  func.func @transform_4(%arg0: i32) -> (i32, i32, i32) {
    %c0_i32 = arith.constant 0 : i32
    %c0_i32_0 = arith.constant 0 : i32
    %c0_i32_1 = arith.constant 0 : i32
    %c0_i32_2 = arith.constant 0 : i32
    return %c0_i32, %c0_i32_0, %c0_i32_1 : i32, i32, i32
  }
  func.func @transform_5(%arg0: i32) -> (i32, i32) {
    %c0_i32 = arith.constant 0 : i32
    %c0_i32_0 = arith.constant 0 : i32
    %c0_i32_1 = arith.constant 0 : i32
    return %c0_i32, %c0_i32_0 : i32, i32
  }
  func.func @transform_6(%arg0: i32) -> (i32, i32) {
    %c0_i32 = arith.constant 0 : i32
    %c0_i32_0 = arith.constant 0 : i32
    return %arg0, %c0_i32 : i32, i32
  }
}

</mosaic_0001>

<bundles_post_ra>
// kernel: tpu_custom_call.1
= control target key start
LH: loop header
LB: loop body
LE: loop exit
PB: predicated region body
PF: predicated region fallthrough
CT: control target
= control target key end

     0   :  { %11 = vsyncpa [#allocation3], 0  ;;  %s2911_s0 = inlined_call_operand.hbm [shape: f32[2,8,32], index: 0, kind: input, shape index: {}]   ;;  %s2912_s1 = inlined_call_operand.hbm [shape: f32[32,64], index: 1, kind: input, shape index: {}]   ;;  %s2913_s2 = inlined_call_operand.hbm [shape: f32[32,64], index: 2, kind: input, shape index: {}]   ;;  %s2914_s3 = inlined_call_operand.hbm [shape: f32[32,64], index: 3, kind: input, shape index: {}]   ;;  %s2915_s4 = inlined_call_operand.hbm [shape: f32[4,16,16], index: 4, kind: input, shape index: {}]   ;;  %s2916_s5 = inlined_call_operand.vmem [shape: f32[1,16], index: 5, kind: input, shape index: {}]   ;;  %s2917_s6 = inlined_call_operand.hbm [shape: f32[2,128], index: 6, kind: output, shape index: {}]  }
   0x1   :  { %12 = vsyncpa [#allocation6], 0 }
   0x2   :  { %13 = vsyncpa [#allocation9], 0 }
   0x3   :  { %14 = vsyncpa [#allocation4], 0  ;;  %s2574_s21 = smov [#allocation5]   ;;  %s2575_s23 = smov [#allocation8]  }
   0x4   :  { %s32_s22 = sshll.u32 %s2574_s21, 4  ;;  %s56_s24 = sshll.u32 %s2575_s23, 4  ;;  %s33_s22 = int_to_ptr.vmem [resolvable:$true] %s32_s22  ;;  %s2626_s24 = int_to_ptr.vmem [resolvable:$true] %s56_s24 }
   0x5   :  { %s2434_s27 = scalar_lea.hbm %s2912_s1, 512 }
   0x6   :  { %p2435_p0 = scmp.ne.s32.totalorder %s2912_s1, %s2434_s27  ;;  %p2438_p1 = scmp.lt.u32.totalorder %s2434_s27, %s2912_s1 }
   0x8   :  { %p2440_p2 = pnand %p2438_p1, %p2435_p0 }
   0xa   :  { %2443 = shalt.err (!%p2440_p2)
}
   0xb   :  { %s2444_s8 = scalar_lea.vmem %s33_s22, 512  ;;  %p2449_p4 = scmp.lt.s32.totalorder %s33_s22, %s33_s22 }
   0xc   :  { %p2445_p3 = scmp.ne.s32.totalorder %s33_s22, %s2444_s8  ;;  %p2450_p5 = scmp.lt.s32.totalorder %s2444_s8, %s2444_s8 }
   0xe   :  { %p2451_p6 = por %p2450_p5, %p2449_p4 }
  0x10   :  { %p2452_p7 = pnand %p2451_p6, %p2445_p3 }
  0x12   :  { %2455 = shalt.err (!%p2452_p7)
}
  0x13   :  { %s2576_s9 = smov 128   ;;  %s2577_s10 = smov 8  }
  0x14   :  { %38 = dma.hbm_to_vmem [thread:$0]  %s2912_s1, 512, %s33_s22, [#allocation6], %s2576_s9, %s2576_s9, %s2577_s10  }
  0x15   :  { %s2456_s15 = scalar_lea.hbm %s2914_s3, 512 }
  0x16   :  { %p2457_p8 = scmp.ne.s32.totalorder %s2914_s3, %s2456_s15  ;;  %p2460_p9 = scmp.lt.u32.totalorder %s2456_s15, %s2914_s3 }
  0x18   :  { %p2462_p10 = pnand %p2460_p9, %p2457_p8 }
  0x1a   :  { %2465 = shalt.err (!%p2462_p10)
}
  0x1b   :  { %s2466_s20 = scalar_lea.vmem %s2626_s24, 512  ;;  %p2471_p12 = scmp.lt.s32.totalorder %s2626_s24, %s2626_s24 }
  0x1c   :  { %p2467_p11 = scmp.ne.s32.totalorder %s2626_s24, %s2466_s20  ;;  %p2472_p13 = scmp.lt.s32.totalorder %s2466_s20, %s2466_s20 }
  0x1e   :  { %p2473_p0 = por %p2472_p13, %p2471_p12 }
  0x20   :  { %p2474_p1 = pnand %p2473_p0, %p2467_p11 }
  0x22   :  { %2477 = shalt.err (!%p2474_p1)
}
  0x23   :  { %62 = dma.hbm_to_vmem [thread:$0]  %s2914_s3, 512, %s2626_s24, [#allocation9], %s2576_s9, %s2576_s9, %s2577_s10  }
  0x24   :  { %s2578_s22 = smov [#allocation2]   ;;  %s2579_s25 = smov [#allocation7]  }
  0x25   :  { %s20_s23 = sshll.u32 %s2578_s22, 4  ;;  %s44_s26 = sshll.u32 %s2579_s25, 4  ;;  %s21_s23 = int_to_ptr.vmem [resolvable:$true] %s20_s23  ;;  %s2663_s26 = int_to_ptr.vmem [resolvable:$true] %s44_s26 }
  0x26   :  { %s2478_s29 = scalar_lea.hbm %s2911_s0, 256 }
  0x27   :  { %p2479_p2 = scmp.ne.s32.totalorder %s2911_s0, %s2478_s29  ;;  %p2482_p3 = scmp.lt.u32.totalorder %s2478_s29, %s2911_s0 }
  0x29   :  { %p2484_p4 = pnand %p2482_p3, %p2479_p2 }
  0x2b   :  { %2487 = shalt.err (!%p2484_p4)
}
  0x2c   :  { %s2488_s3 = scalar_lea.vmem %s21_s23, 256  ;;  %p2493_p6 = scmp.lt.s32.totalorder %s21_s23, %s21_s23 }
  0x2d   :  { %p2489_p5 = scmp.ne.s32.totalorder %s21_s23, %s2488_s3  ;;  %p2494_p7 = scmp.lt.s32.totalorder %s2488_s3, %s2488_s3 }
  0x2f   :  { %p2495_p8 = por %p2494_p7, %p2493_p6 }
  0x31   :  { %p2496_p9 = pnand %p2495_p8, %p2489_p5 }
  0x33   :  { %2499 = shalt.err (!%p2496_p9)
}
  0x34   :  { %26 = dma.hbm_to_vmem [thread:$0]  %s2911_s0, 256, %s21_s23, [#allocation3], %s2576_s9, %s2576_s9, %s2577_s10  }
  0x35   :  { %s2500_s15 = scalar_lea.hbm %s2913_s2, 512 }
  0x36   :  { %p2501_p10 = scmp.ne.s32.totalorder %s2913_s2, %s2500_s15  ;;  %p2504_p11 = scmp.lt.u32.totalorder %s2500_s15, %s2913_s2 }
  0x38   :  { %p2506_p12 = pnand %p2504_p11, %p2501_p10 }
  0x3a   :  { %2509 = shalt.err (!%p2506_p12)
}
  0x3b   :  { %s2510_s20 = scalar_lea.vmem %s2663_s26, 512  ;;  %p2515_p0 = scmp.lt.s32.totalorder %s2663_s26, %s2663_s26 }
  0x3c   :  { %p2511_p13 = scmp.ne.s32.totalorder %s2663_s26, %s2510_s20  ;;  %p2516_p1 = scmp.lt.s32.totalorder %s2510_s20, %s2510_s20 }
  0x3e   :  { %p2517_p2 = por %p2516_p1, %p2515_p0 }
  0x40   :  { %p2518_p3 = pnand %p2517_p2, %p2511_p13 }
  0x42   :  { %2521 = shalt.err (!%p2518_p3)
}
  0x43   :  { %50 = dma.hbm_to_vmem [thread:$0]  %s2913_s2, 512, %s2663_s26, [#allocation6], %s2576_s9, %s2576_s9, %s2577_s10  }
  0x44   :  { %s2580_s21 = smov [#allocation10]   ;;  %s2522_s27 = scalar_lea.hbm %s2915_s4, 1024 }
  0x45   :  { %s68_s22 = sshll.u32 %s2580_s21, 4  ;;  %p2523_p4 = scmp.ne.s32.totalorder %s2915_s4, %s2522_s27  ;;  %s69_s22 = int_to_ptr.vmem [resolvable:$true] %s68_s22 }
  0x46   :  { %p2526_p5 = scmp.lt.u32.totalorder %s2522_s27, %s2915_s4 }
  0x48   :  { %p2528_p6 = pnand %p2526_p5, %p2523_p4 }
  0x4a   :  { %2531 = shalt.err (!%p2528_p6)
}
  0x4b   :  { %s2532_s8 = scalar_lea.vmem %s69_s22, 1024  ;;  %p2537_p8 = scmp.lt.s32.totalorder %s69_s22, %s69_s22 }
  0x4c   :  { %p2533_p7 = scmp.ne.s32.totalorder %s69_s22, %s2532_s8  ;;  %p2538_p9 = scmp.lt.s32.totalorder %s2532_s8, %s2532_s8 }
  0x4e   :  { %p2539_p10 = por %p2538_p9, %p2537_p8 }
  0x50   :  { %p2540_p11 = pnand %p2539_p10, %p2533_p7 }
  0x52   :  { %2543 = shalt.err (!%p2540_p11)
}
  0x53   :  { %74 = dma.hbm_to_vmem [thread:$0]  %s2915_s4, 1024, %s69_s22, [#allocation9], %s2576_s9, %s2576_s9, %s2577_s10  }
  0x54   :  { %2566 = dma.done.wait [#allocation3], 256  }
  0x55   :  { %2567 = vsyncadd [#allocation3], 4294967040 }
  0x56   :  { %2568 = dma.done.wait [#allocation6], 1024  }
  0x57   :  { %2569 = vsyncadd [#allocation6], 4294966272 }
  0x58   :  { %2570 = dma.done.wait [#allocation9], 1536  }
  0x59   :  { %2571 = vsyncadd [#allocation9], 4294965760  ;;  %v94_v0 = vld [vmem:[#allocation5] sm:$0xff]  ;;  %v95_v1 = vld [vmem:[#allocation5 + $0x8] sm:$0xff]  ;;  %vm98_vm0 = vcmask 261120   ;;  %v2581_v14 = vmov 0.0   ;;  %v979_v39 = vlaneseq }
  0x5a   :  { %v180_v2 = vld [vmem:[#allocation7] sm:$0xff]  ;;  %v2345_v3 = vpack.c.bf16 %v95_v1, %v94_v0  ;;  %v181_v4 = vld [vmem:[#allocation7 + $0x8] sm:$0xff]  ;;  %v96_v5 = vld [vmem:[#allocation5 + $0x10] sm:$0xff]  ;;  %vm2582_vm1 = vmmov 0   ;;  %vm386_vm2 = vcmask 130048   ;;  %s2583_s4 = smov 112  }
  0x5b   :  { %v97_v6 = vld [vmem:[#allocation5 + $0x18] sm:$0xff]  ;;  %v2353_v7 = vpack.c.bf16 %v181_v4, %v180_v2  ;;  %v182_v9 = vld [vmem:[#allocation7 + $0x10] sm:$0xff]  ;;  %v259_v15 = vld [vmem:[#allocation8] sm:$0xff]  ;;  %s2584_s9 = smov 96   ;;  %s2585_s10 = smov 80   ;;  %v980_v40 = vshrl.u32 %v979_v39, 7 }
  0x5c   :  { %v2349_v8 = vpack.c.bf16 %v97_v6, %v96_v5  ;;  %v183_v10 = vld [vmem:[#allocation7 + $0x18] sm:$0xff]  ;;  %v92_v11 = vld [vmem:[#allocation2] sm:$0xff]  ;;  %2346 = vmatprep.subr.bf16.mxu0 %v2345_v3  ;;  %v260_v16 = vld [vmem:[#allocation8 + $0x8] sm:$0xff]  ;;  %v982_v41 = vand.u32 127, %v979_v39  ;;  %vm994_vm4 = vcmask 64512   ;;  %vm2025_vm5 = vcmask 1041409  }
  0x5d   :  { %v2357_v12 = vpack.c.bf16 %v183_v10, %v182_v9  ;;  %2212 = vmatprep.mubr.msk.f32.mxu0 %vm98_vm0, %v92_v11  ;;  %2354 = vmatprep.subr.bf16.mxu1 %v2353_v7  ;;  %v93_v13 = vld [vmem:[#allocation2 + $0x8] sm:$0xff]  ;;  %v261_v17 = vld [vmem:[#allocation8 + $0x10] sm:$0xff]  ;;  %v2361_v18 = vpack.c.bf16 %v260_v16, %v259_v15  ;;  %s2587_s24 = smov 16   ;;  %s2588_s12 = smov 64   ;;  %vm2071_vm6 = vcmask 392192   ;;  %vm2073_vm7 = vcmask 523264  }
  0x5e   :  { %2348 = vmatpush3.bf16.msra.mxu0 %v2345_v3  ;;  %2356 = vmatpush3.bf16.msra.mxu1 %v2353_v7  ;;  %v262_v19 = vld [vmem:[#allocation8 + $0x18] sm:$0xff]  ;;  %vm2787_vm3 = vcmp.ge.s32.totalorder %v980_v40, %v982_v41  ;;  %s2589_s13 = smov 48   ;;  %vm2075_vm8 = vcmask 654336   ;;  %vm2077_vm9 = vcmask 785408   ;;  %s2590_s14 = smov [#allocation11]   ;;  %vm2079_vm10 = vcmask 916480  }
  0x5f   :  { %2350 = vmatprep.subr.bf16.mxu0 %v2349_v8  ;;  %2358 = vmatprep.subr.bf16.mxu1 %v2357_v12  ;;  %v2365_v20 = vpack.c.bf16 %v262_v19, %v261_v17  ;;  %s2088_s15 = sshll.u32 %s2590_s14, 4  ;;  %s2089_s15 = int_to_ptr.vmem [resolvable:$true] %s2088_s15 }
  0x60   :  { %2223 = vmatprep.mubr.msk.f32.mxu1 %vm98_vm0, %v92_v11  ;;  %s2544_s16 = scalar_lea.vmem %s2089_s15, 32  ;;  %p2549_p13 = scmp.lt.s32.totalorder %s2089_s15, %s2089_s15 }
  0x61   :  { %p2545_p12 = scmp.ne.s32.totalorder %s2089_s15, %s2544_s16  ;;  %p2550_p0 = scmp.lt.s32.totalorder %s2544_s16, %s2544_s16 }
  0x62   :  { %2352 = vmatpush3.bf16.msra.mxu0 %v2349_v8  ;;  %2360 = vmatpush3.bf16.msra.mxu1 %v2357_v12 }
  0x63   :  { %2237 = vmatprep.subr.mxu1 %v2581_v14  ;;  %2362 = vmatprep.subr.bf16.mxu0 %v2361_v18  ;;  %p2551_p1 = por %p2550_p0, %p2549_p13 }
  0x65   :  { %2213 = vmatmul.mubr.msk.f32.vlgmr.msra.gmra.mrb[0].mxu0 %vm98_vm0, %v93_v13  ;;  %2224 = vmatmul.mubr.msk.f32.vlgmr.msra.gmra.mrb[0].mxu1 %vm98_vm0, %v93_v13  ;;  %p2552_p2 = pnand %p2551_p1, %p2545_p12 }
  0x66   :  { %2234 = vmatprep.mubr.msk.f32.mxu0 %vm98_vm0, %v92_v11  ;;  %2239 = vmatprep.mubr.msk.f32.mxu1 %vm2582_vm1, %v2581_v14 }
  0x67   :  { %2364 = vmatpush3.bf16.msra.mxu0 %v2361_v18 }
  0x68   :  { %2366 = vmatprep.subr.bf16.mxu0 %v2365_v20 }
  0x6b   :  { %2368 = vmatpush3.bf16.msra.mxu0 %v2365_v20 }
  0x6c   :  { %2247 = vmatprep.subr.mxu0 %v2581_v14 }
  0x6e   :  { %2235 = vmatmul.mubr.msk.f32.vlgmr.msra.gmra.mrb[2].mxu0 %vm98_vm0, %v93_v13 }
  0x6f   :  { %2249 = vmatprep.mubr.msk.f32.mxu0 %vm2582_vm1, %v2581_v14 }
 0x138   :  { %v2214_v21 = vpop.f32.mrb[0].mxu0  ;;  %v2225_v22 = vpop.f32.mrb[0].mxu1 }
 0x139   :  { %342 = vrot.lane.b32.xlu1 %v2214_v21, %s2583_s4  ;;  %v171_v23 = vpop.f32.mrb[1].mxu0  ;;  %356 = vrot.lane.b32.xlu0 %v2225_v22, %s2583_s4  ;;  %v250_v24 = vpop.f32.mrb[1].mxu1 }
 0x13a   :  { %2238 = vmatpush3.xpose.msk.msra.mxu1 %vm386_vm2, %v250_v24 }
 0x13b   :  { %2242 = vmatprep.subr.mxu1 %v2581_v14 }
 0x13d   :  { %360 = vrot.lane.b32.xlu1 %v2225_v22, %s2584_s9  ;;  %354 = vrot.lane.b32.xlu0 %v250_v24, %s2583_s4 }
 0x13e   :  { %2240 = vmatmul.mubr.msk.f32.vlgmr.msra.gmra.mrb[2].mxu1 %vm386_vm2, %v171_v23 }
 0x13f   :  { %2243 = vmatpush3.xpose.msk.msra.mxu1 %vm386_vm2, %v2225_v22  ;;  %2244 = vmatprep.mubr.msk.f32.mxu1 %vm2582_vm1, %v2581_v14 }
 0x140   :  { %2252 = vmatprep.subr.mxu1 %v2581_v14 }
 0x141   :  { %340 = vrot.lane.b32.xlu1 %v171_v23, %s2583_s4  ;;  %358 = vrot.lane.b32.xlu0 %v250_v24, %s2584_s9  ;;  %v2779_v37 = vpop.f32.mrb[2].mxu0 }
 0x142   :  { %2245 = vmatmul.mubr.msk.f32.vlgmr.msra.gmra.mrb[4].mxu1 %vm386_vm2, %v2214_v21  ;;  %v2781_v38 = vpop.f32.mrb[3].mxu0 }
 0x143   :  { %2254 = vmatprep.mubr.msk.f32.mxu1 %vm2582_vm1, %v2581_v14 }
 0x145   :  { %346 = vrot.lane.b32.xlu1 %v2214_v21, %s2584_s9  ;;  %344 = vrot.lane.b32.xlu0 %v171_v23, %s2584_s9 }
 0x149   :  { %364 = vrot.lane.b32.xlu1 %v2225_v22, %s2585_s10  ;;  %362 = vrot.lane.b32.xlu0 %v250_v24, %s2585_s10 }
 0x14d   :  { %350 = vrot.lane.b32.xlu1 %v2214_v21, %s2585_s10  ;;  %348 = vrot.lane.b32.xlu0 %v171_v23, %s2585_s10 }
 0x1ab   :  { %v343_v25 = vpop.permute.xlu1 %342  ;;  %v357_v26 = vpop.permute.xlu0 %356 }
 0x1ac   :  { %2253 = vmatpush3.xpose.msk.msra.mxu1 %vm386_vm2, %v357_v26 }
 0x1ad   :  { %2262 = vmatprep.subr.mxu1 %v2581_v14 }
 0x1af   :  { %v361_v27 = vpop.permute.xlu1 %360  ;;  %v355_v28 = vpop.permute.xlu0 %354  ;;  %2255 = vmatmul.mubr.msk.f32.vlgmr.msra.gmra.mrb[6].mxu1 %vm386_vm2, %v343_v25 }
 0x1b0   :  { %2248 = vmatpush3.xpose.msk.msra.mxu0 %vm386_vm2, %v355_v28  ;;  %2263 = vmatpush3.xpose.msk.msra.mxu1 %vm386_vm2, %v361_v27 }
 0x1b1   :  { %2257 = vmatprep.subr.mxu0 %v2581_v14  ;;  %2264 = vmatprep.mubr.msk.f32.mxu1 %vm2582_vm1, %v2581_v14 }
 0x1b2   :  { %2272 = vmatprep.subr.mxu1 %v2581_v14 }
 0x1b3   :  { %v341_v29 = vpop.permute.xlu1 %340  ;;  %v359_v30 = vpop.permute.xlu0 %358 }
 0x1b4   :  { %2250 = vmatmul.mubr.msk.f32.vlgmr.msra.gmra.mrb[4].mxu0 %vm386_vm2, %v341_v29 }
 0x1b5   :  { %2258 = vmatpush3.xpose.msk.msra.mxu0 %vm386_vm2, %v359_v30  ;;  %2259 = vmatprep.mubr.msk.f32.mxu0 %vm2582_vm1, %v2581_v14 }
 0x1b6   :  { %2267 = vmatprep.subr.mxu0 %v2581_v14 }
 0x1b7   :  { %v347_v31 = vpop.permute.xlu1 %346  ;;  %v345_v32 = vpop.permute.xlu0 %344 }
 0x1b8   :  { %2265 = vmatmul.mubr.msk.f32.vlgmr.msra.gmra.mrb[8].mxu1 %vm386_vm2, %v347_v31  ;;  %2260 = vmatmul.mubr.msk.f32.vlgmr.msra.gmra.mrb[6].mxu0 %vm386_vm2, %v345_v32 }
 0x1b9   :  { %2274 = vmatprep.mubr.msk.f32.mxu1 %vm2582_vm1, %v2581_v14  ;;  %2269 = vmatprep.mubr.msk.f32.mxu0 %vm2582_vm1, %v2581_v14 }
 0x1bb   :  { %v365_v33 = vpop.permute.xlu1 %364  ;;  %v363_v34 = vpop.permute.xlu0 %362 }
 0x1bc   :  { %2273 = vmatpush3.xpose.msk.msra.mxu1 %vm386_vm2, %v365_v33  ;;  %2268 = vmatpush3.xpose.msk.msra.mxu0 %vm386_vm2, %v363_v34 }
 0x1bd   :  { %2282 = vmatprep.subr.mxu1 %v2581_v14  ;;  %2277 = vmatprep.subr.mxu0 %v2581_v14 }
 0x1bf   :  { %v351_v35 = vpop.permute.xlu1 %350  ;;  %v349_v36 = vpop.permute.xlu0 %348 }
 0x1c0   :  { %2275 = vmatmul.mubr.msk.f32.vlgmr.msra.gmra.mrb[10].mxu1 %vm386_vm2, %v351_v35  ;;  %2270 = vmatmul.mubr.msk.f32.vlgmr.msra.gmra.mrb[8].mxu0 %vm386_vm2, %v349_v36 }
 0x1c1   :  { %2284 = vmatprep.mubr.msk.f32.mxu1 %vm2582_vm1, %v2581_v14  ;;  %2279 = vmatprep.mubr.msk.f32.mxu0 %vm2582_vm1, %v2581_v14 }
 0x1c2   :  { %2283 = vmatpush3.msra.mxu1 %v2779_v37  ;;  %2278 = vmatpush3.msra.mxu0 %v2781_v38 }
 0x1c3   :  { %2292 = vmatprep.subr.mxu1 %v2581_v14  ;;  %2287 = vmatprep.subr.mxu0 %v2581_v14 }
 0x211   :  { %v457_v43 = vpop.f32.mrb[2].mxu1 }
 0x212   :  { %v986_v44 = vsel %vm2787_vm3, %v457_v43, -inf  ;;  %v2241_v45 = vpop.f32.mrb[3].mxu1 }
 0x213   :  { %v995_v46 = vsel %vm994_vm4, %v986_v44, -inf }
 0x214   :  { %996 = vmax.xlane.f32.xlu0 %v995_v46 }
 0x215   :  { %v531_v47 = vpop.f32.mrb[4].mxu1 }
 0x216   :  { %v987_v48 = vsel %vm2787_vm3, %v531_v47, -inf  ;;  %v2246_v49 = vpop.f32.mrb[5].mxu1 }
 0x217   :  { %v998_v50 = vsel %vm994_vm4, %v987_v48, -inf }
 0x218   :  { %999 = vmax.xlane.f32.xlu1 %v998_v50 }
 0x282   :  { %v679_v51 = vpop.f32.mrb[6].mxu1 }
 0x283   :  { %v2256_v52 = vpop.f32.mrb[7].mxu1  ;;  %v989_v57 = vsel %vm2787_vm3, %v679_v51, -inf }
 0x284   :  { %v1004_v63 = vsel %vm994_vm4, %v989_v57, -inf }
 0x287   :  { %v605_v53 = vpop.f32.mrb[4].mxu0 }
 0x288   :  { %v988_v54 = vsel %vm2787_vm3, %v605_v53, -inf  ;;  %v2251_v55 = vpop.f32.mrb[5].mxu0 }
 0x289   :  { %v1001_v56 = vsel %vm994_vm4, %v988_v54, -inf }
 0x28a   :  { %1002 = vmax.xlane.f32.xlu0 %v1001_v56 }
 0x28b   :  { %v827_v58 = vpop.f32.mrb[8].mxu1  ;;  %v753_v59 = vpop.f32.mrb[6].mxu0 }
 0x28c   :  { %v2266_v60 = vpop.f32.mrb[9].mxu1  ;;  %v990_v61 = vsel %vm2787_vm3, %v753_v59, -inf  ;;  %v2261_v62 = vpop.f32.mrb[7].mxu0  ;;  %v991_v0 = vsel %vm2787_vm3, %v827_v58, -inf }
 0x28d   :  { %v1007_v1 = vsel %vm994_vm4, %v990_v61, -inf  ;;  %v1010_v2 = vsel %vm994_vm4, %v991_v0, -inf }
 0x28e   :  { %1005 = vmax.xlane.f32.xlu0 %v1004_v63  ;;  %1008 = vmax.xlane.f32.xlu1 %v1007_v1 }
 0x292   :  { %1011 = vmax.xlane.f32.xlu0 %v1010_v2 }
 0x293   :  { %v975_v3 = vpop.f32.mrb[10].mxu1  ;;  %v901_v4 = vpop.f32.mrb[8].mxu0 }
 0x294   :  { %v993_v5 = vsel %vm2787_vm3, %v975_v3, -inf  ;;  %v2276_v6 = vpop.f32.mrb[11].mxu1  ;;  %v992_v7 = vsel %vm2787_vm3, %v901_v4, -inf  ;;  %v2271_v8 = vpop.f32.mrb[9].mxu0 }
 0x295   :  { %v1016_v9 = vsel %vm994_vm4, %v993_v5, -inf  ;;  %v1013_v10 = vsel %vm994_vm4, %v992_v7, -inf  ;;  %v1668_v8 = vld [vmem:[#allocation10 + $0x8] sm:$0xff] }
 0x296   :  { %1017 = vmax.xlane.f32.xlu0 %v1016_v9  ;;  %1014 = vmax.xlane.f32.xlu1 %v1013_v10 }
 0x2a1   :  { %v997_v15 = vpop.xlane.xlu0 %996 }
 0x2a2   :  { %v1019_v16 = vsub.f32 %v986_v44, %v997_v15 }
 0x2a4   :  { %v1027_v17 = vmul.f32 1.442695, %v1019_v16 }
 0x2a5   :  { %v1000_v11 = vpop.xlane.xlu1 %999 }
 0x2a6   :  { %v1020_v12 = vsub.f32 %v987_v48, %v1000_v11 }
 0x2a7   :  { %368 = vrot.lane.b32.xlu1 %v2781_v38, %s2583_s4 }
 0x2a8   :  { %v1029_v13 = vmul.f32 1.442695, %v1020_v12 }
 0x2aa   :  { %2402 = vpow2.f32 %v1029_v13 }
 0x2ab   :  { %374 = vrot.lane.b32.xlu1 %v2781_v38, %s2584_s9  ;;  %2404 = vpow2.f32 %v1027_v17 }
 0x2ac   :  { %370 = vrot.lane.b32.xlu0 %v2779_v37, %s2583_s4 }
 0x2af   :  { %376 = vrot.lane.b32.xlu1 %v2779_v37, %s2584_s9 }
 0x2b4   :  { %v2403_v18 = vpop.eup %2402 }
 0x2b5   :  { %v1046_v19 = vsel %vm994_vm4, %v2403_v18, 0.0  ;;  %v2405_v20 = vpop.eup %2404 }
 0x2b6   :  { %v1043_v21 = vsel %vm994_vm4, %v2405_v20, 0.0 }
 0x2cb   :  { %1047 = vadd.xlane.f32.xlu0 %v1046_v19 }
 0x2d3   :  { %1044 = vadd.xlane.f32.xlu1 %v1043_v21 }
 0x317   :  { %v1003_v22 = vpop.xlane.xlu0 %1002 }
 0x318   :  { %v1021_v23 = vsub.f32 %v988_v54, %v1003_v22  ;;  %v1669_v22 = vld [vmem:[#allocation10 + $0x10] sm:$0xff] }
 0x31a   :  { %v1031_v24 = vmul.f32 1.442695, %v1021_v23  ;;  %v1670_v23 = vld [vmem:[#allocation10 + $0x18] sm:$0xff] }
 0x31b   :  { %v1006_v25 = vpop.xlane.xlu0 %1005  ;;  %v1009_v27 = vpop.xlane.xlu1 %1008 }
 0x31c   :  { %2406 = vpow2.f32 %v1031_v24  ;;  %v1022_v26 = vsub.f32 %v989_v57, %v1006_v25  ;;  %v1023_v28 = vsub.f32 %v990_v61, %v1009_v27  ;;  %v2373_v24 = vpack.c.bf16 %v1670_v23, %v1669_v22  ;;  %v1671_v25 = vld [vmem:[#allocation10 + $0x20] sm:$0xff] }
 0x31e   :  { %v1033_v29 = vmul.f32 1.442695, %v1022_v26  ;;  %v1035_v30 = vmul.f32 1.442695, %v1023_v28  ;;  %v1672_v26 = vld [vmem:[#allocation10 + $0x28] sm:$0xff]  ;;  %v1674_v28 = vld [vmem:[#allocation10 + $0x38] sm:$0xff] }
 0x31f   :  { %v1012_v31 = vpop.xlane.xlu0 %1011  ;;  %v2377_v27 = vpack.c.bf16 %v1672_v26, %v1671_v25 }
 0x320   :  { %2408 = vpow2.f32 %v1033_v29  ;;  %v1024_v32 = vsub.f32 %v991_v0, %v1012_v31 }
 0x321   :  { %2410 = vpow2.f32 %v1035_v30 }
 0x322   :  { %v1037_v33 = vmul.f32 1.442695, %v1024_v32 }
 0x323   :  { %v1018_v34 = vpop.xlane.xlu0 %1017  ;;  %v1015_v36 = vpop.xlane.xlu1 %1014 }
 0x324   :  { %2412 = vpow2.f32 %v1037_v33  ;;  %v1026_v35 = vsub.f32 %v993_v5, %v1018_v34  ;;  %v1025_v39 = vsub.f32 %v992_v7, %v1015_v36  ;;  %v1667_v7 = vld [vmem:[#allocation10] sm:$0xff] }
 0x325   :  { %v2369_v13 = vpack.c.bf16 %v1668_v8, %v1667_v7 }
 0x326   :  { %v2407_v40 = vpop.eup %2406  ;;  %v1041_v41 = vmul.f32 1.442695, %v1026_v35  ;;  %v1039_v42 = vmul.f32 1.442695, %v1025_v39 }
 0x327   :  { %v1049_v43 = vsel %vm994_vm4, %v2407_v40, 0.0  ;;  %v369_v54 = vpop.permute.xlu1 %368  ;;  %v371_v55 = vpop.permute.xlu0 %370 }
 0x328   :  { %2414 = vpow2.f32 %v1041_v41  ;;  %1050 = vadd.xlane.f32.xlu1 %v1049_v43 }
 0x329   :  { %2416 = vpow2.f32 %v1039_v42 }
 0x32a   :  { %v2409_v44 = vpop.eup %2408 }
 0x32b   :  { %v2411_v45 = vpop.eup %2410  ;;  %v1052_v46 = vsel %vm994_vm4, %v2409_v44, 0.0  ;;  %v375_v56 = vpop.permute.xlu1 %374 }
 0x32c   :  { %1053 = vadd.xlane.f32.xlu0 %v1052_v46  ;;  %v1055_v47 = vsel %vm994_vm4, %v2411_v45, 0.0 }
 0x32d   :  { %1056 = vadd.xlane.f32.xlu1 %v1055_v47 }
 0x32e   :  { %v2413_v48 = vpop.eup %2412 }
 0x32f   :  { %v1058_v49 = vsel %vm994_vm4, %v2413_v48, 0.0  ;;  %v377_v58 = vpop.permute.xlu1 %376 }
 0x330   :  { %1059 = vadd.xlane.f32.xlu0 %v1058_v49 }
 0x332   :  { %v2829_v50 = vpop.eup %2414 }
 0x333   :  { %v2831_v51 = vpop.eup %2416  ;;  %v1064_v52 = vsel %vm994_vm4, %v2829_v50, 0.0 }
 0x334   :  { %1065 = vadd.xlane.f32.xlu0 %v1064_v52  ;;  %v1061_v53 = vsel %vm994_vm4, %v2831_v51, 0.0 }
 0x335   :  { %1062 = vadd.xlane.f32.xlu1 %v1061_v53 }
 0x346   :  { %382 = vrot.lane.b32.xlu1 %v2779_v37, %s2585_s10 }
 0x34a   :  { %380 = vrot.lane.b32.xlu0 %v2781_v38, %s2585_s10 }
 0x358   :  { %v1048_v57 = vpop.xlane.xlu0 %1047 }
 0x359   :  { %2418 = vrcp.f32 %v1048_v57 }
 0x360   :  { %v1045_v59 = vpop.xlane.xlu1 %1044 }
 0x361   :  { %2420 = vrcp.f32 %v1045_v59 }
 0x363   :  { %v2419_v60 = vpop.eup %2418 }
 0x364   :  { %v1076_v61 = vmul.f32 %v2419_v60, %v2403_v18 }
 0x366   :  { %2285 = vmatmul.mubr.msk.f32.vlgmr.msra.gmra.mrb[12].mxu1 %vm994_vm4, %v1076_v61 }
 0x367   :  { %2293 = vmatpush3.msra.mxu1 %v371_v55  ;;  %2294 = vmatprep.mubr.msk.f32.mxu1 %vm2582_vm1, %v2581_v14 }
 0x368   :  { %2302 = vmatprep.subr.mxu1 %v2581_v14 }
 0x36b   :  { %v2421_v37 = vpop.eup %2420 }
 0x36c   :  { %v1075_v38 = vmul.f32 %v2421_v37, %v2405_v20 }
 0x36e   :  { %2280 = vmatmul.mubr.msk.f32.vlgmr.msra.gmra.mrb[10].mxu0 %vm994_vm4, %v1075_v38 }
 0x36f   :  { %2288 = vmatpush3.msra.mxu0 %v369_v54  ;;  %2289 = vmatprep.mubr.msk.f32.mxu0 %vm2582_vm1, %v2581_v14 }
 0x370   :  { %2297 = vmatprep.subr.mxu0 %v2581_v14 }
 0x3b5   :  { %v1051_v62 = vpop.xlane.xlu1 %1050 }
 0x3b6   :  { %2422 = vrcp.f32 %v1051_v62 }
 0x3b9   :  { %v1054_v63 = vpop.xlane.xlu0 %1053 }
 0x3ba   :  { %2424 = vrcp.f32 %v1054_v63  ;;  %v1057_v0 = vpop.xlane.xlu1 %1056 }
 0x3bb   :  { %2426 = vrcp.f32 %v1057_v0  ;;  %v2137_v0 = vld [vmem:[%s2916_s5] ss:$0 sm:$0xff]  ;;  %s2586_s5 = smov 32  }
 0x3bd   :  { %v1060_v1 = vpop.xlane.xlu0 %1059 }
 0x3be   :  { %2428 = vrcp.f32 %v1060_v1 }
 0x3c0   :  { %v2423_v2 = vpop.eup %2422 }
 0x3c1   :  { %v1077_v3 = vmul.f32 %v2423_v2, %v2407_v40  ;;  %v1066_v4 = vpop.xlane.xlu0 %1065 }
 0x3c2   :  { %2430 = vrcp.f32 %v1066_v4  ;;  %v1063_v5 = vpop.xlane.xlu1 %1062 }
 0x3c3   :  { %2432 = vrcp.f32 %v1063_v5  ;;  %2290 = vmatmul.mubr.msk.f32.vlgmr.msra.gmra.mrb[12].mxu0 %vm994_vm4, %v1077_v3 }
 0x3c4   :  { %v2425_v6 = vpop.eup %2424  ;;  %2298 = vmatpush3.msra.mxu0 %v375_v56  ;;  %2299 = vmatprep.mubr.msk.f32.mxu0 %vm2582_vm1, %v2581_v14 }
 0x3c5   :  { %v2427_v9 = vpop.eup %2426  ;;  %v1078_v10 = vmul.f32 %v2425_v6, %v2409_v44  ;;  %2307 = vmatprep.subr.mxu0 %v2581_v14  ;;  %v381_v12 = vpop.permute.xlu0 %380 }
 0x3c6   :  { %v1079_v11 = vmul.f32 %v2427_v9, %v2411_v45  ;;  %v383_v17 = vpop.permute.xlu1 %382 }
 0x3c7   :  { %2295 = vmatmul.mubr.msk.f32.vlgmr.msra.gmra.mrb[14].mxu1 %vm994_vm4, %v1078_v10 }
 0x3c8   :  { %v2429_v15 = vpop.eup %2428  ;;  %2300 = vmatmul.mubr.msk.f32.vlgmr.msra.gmra.mrb[14].mxu0 %vm994_vm4, %v1079_v11  ;;  %2303 = vmatpush3.msra.mxu1 %v377_v58 }
 0x3c9   :  { %v1080_v16 = vmul.f32 %v2429_v15, %v2413_v48  ;;  %2308 = vmatpush3.msra.mxu0 %v381_v12  ;;  %2304 = vmatprep.mubr.msk.f32.mxu1 %vm2582_vm1, %v2581_v14 }
 0x3ca   :  { %2312 = vmatprep.subr.mxu1 %v2581_v14  ;;  %2309 = vmatprep.mubr.msk.f32.mxu0 %vm2582_vm1, %v2581_v14 }
 0x3cb   :  { %2305 = vmatmul.mubr.msk.f32.vlgmr.msra.gmra.mrb[16].mxu1 %vm994_vm4, %v1080_v16  ;;  %2370 = vmatprep.subr.bf16.mxu0 %v2369_v13 }
 0x3cc   :  { %v2431_v18 = vpop.eup %2430  ;;  %2313 = vmatpush3.msra.mxu1 %v383_v17  ;;  %2314 = vmatprep.mubr.msk.f32.mxu1 %vm2582_vm1, %v2581_v14  ;;  %v1673_v14 = vld [vmem:[#allocation10 + $0x30] sm:$0xff] }
 0x3cd   :  { %v2433_v19 = vpop.eup %2432  ;;  %v1082_v20 = vmul.f32 %v2431_v18, %v2829_v50  ;;  %2374 = vmatprep.subr.bf16.mxu1 %v2373_v24  ;;  %v2381_v29 = vpack.c.bf16 %v1674_v28, %v1673_v14 }
 0x3ce   :  { %v1081_v21 = vmul.f32 %v2433_v19, %v2831_v51 }
 0x3cf   :  { %2315 = vmatmul.mubr.msk.f32.vlgmr.msra.gmra.mrb[18].mxu1 %vm994_vm4, %v1082_v20 }
 0x3d0   :  { %2310 = vmatmul.mubr.msk.f32.vlgmr.msra.gmra.mrb[16].mxu0 %vm994_vm4, %v1081_v21  ;;  %2376 = vmatpush3.bf16.msra.mxu1 %v2373_v24 }
 0x3d1   :  { %2372 = vmatpush3.bf16.msra.mxu0 %v2369_v13  ;;  %2382 = vmatprep.subr.bf16.mxu1 %v2381_v29 }
 0x3d2   :  { %2378 = vmatprep.subr.bf16.mxu0 %v2377_v27 }
 0x439   :  { %v1225_v30 = vpop.f32.mrb[12].mxu1 }
 0x43a   :  { %v2286_v31 = vpop.f32.mrb[13].mxu1 }
 0x441   :  { %v1152_v32 = vpop.f32.mrb[10].mxu0 }
 0x442   :  { %v2281_v33 = vpop.f32.mrb[11].mxu0  ;;  %2321 = vmatprep.mubr.msk.f32.mxu0 %vm386_vm2, %v1152_v32 }
 0x443   :  { %2322 = vmatmul.mubr.msk.f32.vlgmr.msra.gmra.mrb[18].mxu0 %vm386_vm2, %v1225_v30 }
 0x444   :  { %2380 = vmatpush3.bf16.msra.mxu0 %v2377_v27 }
 0x496   :  { %v1298_v34 = vpop.f32.mrb[12].mxu0 }
 0x497   :  { %v2291_v35 = vpop.f32.mrb[13].mxu0  ;;  %2328 = vmatprep.mubr.msk.f32.mxu1 %vm386_vm2, %v1298_v34 }
 0x49a   :  { %v1371_v36 = vpop.f32.mrb[14].mxu1 }
 0x49b   :  { %v1444_v39 = vpop.f32.mrb[14].mxu0  ;;  %v2296_v40 = vpop.f32.mrb[15].mxu1  ;;  %2329 = vmatmul.mubr.msk.f32.vlgmr.msra.gmra.mrb[20].mxu1 %vm386_vm2, %v1371_v36 }
 0x49c   :  { %v2301_v41 = vpop.f32.mrb[15].mxu0  ;;  %2335 = vmatprep.mubr.msk.f32.mxu0 %vm386_vm2, %v1444_v39  ;;  %2384 = vmatpush3.bf16.msra.mxu1 %v2381_v29 }
 0x49e   :  { %v1517_v42 = vpop.f32.mrb[16].mxu1 }
 0x49f   :  { %v2306_v43 = vpop.f32.mrb[17].mxu1  ;;  %2336 = vmatmul.mubr.msk.f32.vlgmr.msra.gmra.mrb[20].mxu0 %vm386_vm2, %v1517_v42 }
 0x4a2   :  { %v1663_v44 = vpop.f32.mrb[18].mxu1 }
 0x4a3   :  { %v1590_v45 = vpop.f32.mrb[16].mxu0  ;;  %v2316_v46 = vpop.f32.mrb[19].mxu1 }
 0x4a4   :  { %v2311_v47 = vpop.f32.mrb[17].mxu0  ;;  %2342 = vmatprep.mubr.msk.f32.mxu1 %vm386_vm2, %v1590_v45 }
 0x4a5   :  { %2343 = vmatmul.mubr.msk.f32.vlgmr.msra.gmra.mrb[22].mxu1 %vm386_vm2, %v1663_v44 }
 0x516   :  { %v2323_v48 = vpop.f32.mrb[18].mxu0 }
 0x517   :  { %v1747_v49 = vpop.f32.mrb[19].mxu0  ;;  %v2006_v51 = vsel %vm386_vm2, %v2323_v48, 0.0 }
 0x518   :  { %v1999_v54 = vsel %vm386_vm2, %v1747_v49, 0.0 }
 0x56e   :  { %v2330_v50 = vpop.f32.mrb[20].mxu1 }
 0x56f   :  { %v2007_v52 = vsel %vm386_vm2, %v2330_v50, 0.0  ;;  %v1828_v53 = vpop.f32.mrb[21].mxu1 }
 0x570   :  { %v2008_v55 = vadd.f32 %v2007_v52, %v2006_v51  ;;  %v2000_v56 = vsel %vm386_vm2, %v1828_v53, 0.0 }
 0x571   :  { %v2001_v57 = vadd.f32 %v2000_v56, %v1999_v54 }
 0x572   :  { %v2337_v58 = vpop.f32.mrb[20].mxu0 }
 0x573   :  { %v2009_v59 = vsel %vm386_vm2, %v2337_v58, 0.0  ;;  %v1909_v60 = vpop.f32.mrb[21].mxu0 }
 0x574   :  { %v2010_v61 = vadd.f32 %v2009_v59, %v2008_v55  ;;  %v2002_v37 = vsel %vm386_vm2, %v1909_v60, 0.0 }
 0x575   :  { %v2003_v38 = vadd.f32 %v2002_v37, %v2001_v57 }
 0x578   :  { %v2344_v62 = vpop.f32.mrb[22].mxu1 }
 0x579   :  { %v2011_v63 = vsel %vm386_vm2, %v2344_v62, 0.0  ;;  %v1990_v1 = vpop.f32.mrb[23].mxu1 }
 0x57a   :  { %v2012_v2 = vadd.f32 %v2011_v63, %v2010_v61  ;;  %v2004_v3 = vsel %vm386_vm2, %v1990_v1, 0.0 }
 0x57b   :  { %v2005_v4 = vadd.f32 %v2004_v3, %v2003_v38 }
 0x57c   :  { %v2021_v5 = vadd.f32 %v2137_v0, %v2012_v2 }
 0x57d   :  { %v2020_v6 = vadd.f32 %v2137_v0, %v2005_v4 }
 0x57e   :  { %v2034_v7 = vrot.slane %v2021_v5, 1  ;;  %v2046_v8 = vrot.slane %v2021_v5, 3  ;;  %v2040_v9 = vrot.slane %v2021_v5, 2  ;;  %v2058_v10 = vrot.slane %v2021_v5, 5 }
 0x57f   :  { %v2033_v11 = vrot.slane %v2020_v6, 2  ;;  %v2028_v12 = vrot.slane %v2020_v6, 1  ;;  %v2045_v13 = vrot.slane %v2020_v6, 4  ;;  %v2039_v15 = vrot.slane %v2020_v6, 3 }
 0x580   :  { %v2057_v16 = vrot.slane %v2020_v6, 6  ;;  %v2051_v17 = vrot.slane %v2020_v6, 5  ;;  %v2052_v18 = vrot.slane %v2021_v5, 4  ;;  %v2063_v19 = vrot.slane %v2020_v6, 7 }
 0x581   :  { %v2035_v20 = vsel %vm2025_vm5, %v2034_v7, %v2033_v11  ;;  %v2029_v21 = vsel %vm2025_vm5, %v2021_v5, %v2028_v12  ;;  %v2047_v22 = vsel %vm2025_vm5, %v2046_v8, %v2045_v13  ;;  %v2041_v23 = vsel %vm2025_vm5, %v2040_v9, %v2039_v15 }
 0x582   :  { %2036 = vrot.lane.b32.xlu1 %v2035_v20, %s2586_s5  ;;  %2030 = vrot.lane.b32.xlu0 %v2029_v21, %s2587_s24  ;;  %v2059_v24 = vsel %vm2025_vm5, %v2058_v10, %v2057_v16  ;;  %v2053_v25 = vsel %vm2025_vm5, %v2052_v18, %v2051_v17  ;;  %v2064_v26 = vrot.slane %v2021_v5, 6  ;;  %v2024_v27 = vrot.slane %v2021_v5, 7 }
 0x584   :  { %v2065_v14 = vsel %vm2025_vm5, %v2064_v26, %v2063_v19  ;;  %v2026_v28 = vsel %vm2025_vm5, %v2024_v27, %v2020_v6 }
 0x586   :  { %2048 = vrot.lane.b32.xlu1 %v2047_v22, %s2588_s12  ;;  %2042 = vrot.lane.b32.xlu0 %v2041_v23, %s2589_s13 }
 0x58a   :  { %2060 = vrot.lane.b32.xlu1 %v2059_v24, %s2584_s9  ;;  %2054 = vrot.lane.b32.xlu0 %v2053_v25, %s2585_s10 }
 0x58e   :  { %2066 = vrot.lane.b32.xlu0 %v2065_v14, %s2583_s4 }
 0x5f4   :  { %v2037_v29 = vpop.permute.xlu1 %2036  ;;  %v2031_v30 = vpop.permute.xlu0 %2030 }
 0x5f5   :  { %v2069_v31 = vsel %vm386_vm2, %v2026_v28, %v2031_v30 }
 0x5f6   :  { %v2070_v34 = vsel %vm98_vm0, %v2069_v31, %v2037_v29 }
 0x5f8   :  { %v2049_v32 = vpop.permute.xlu1 %2048  ;;  %v2043_v33 = vpop.permute.xlu0 %2042 }
 0x5f9   :  { %v2072_v35 = vsel %vm2071_vm6, %v2070_v34, %v2043_v33 }
 0x5fa   :  { %v2074_v39 = vsel %vm2073_vm7, %v2072_v35, %v2049_v32 }
 0x5fc   :  { %v2055_v36 = vpop.permute.xlu0 %2054  ;;  %v2061_v40 = vpop.permute.xlu1 %2060 }
 0x5fd   :  { %v2076_v41 = vsel %vm2075_vm8, %v2074_v39, %v2055_v36 }
 0x5fe   :  { %v2078_v43 = vsel %vm2077_vm9, %v2076_v41, %v2061_v40 }
 0x600   :  { %v2067_v42 = vpop.permute.xlu0 %2066 }
 0x601   :  { %v2080_v44 = vsel %vm2079_vm10, %v2078_v43, %v2067_v42 }
 0x602   :  { %2081 = vst [vmem:[#allocation11] sm:$0x3] %v2080_v44 }
 0x603   :  { %2555 = shalt.err (!%p2552_p2)
}
 0x604   :  { %s2556_s19 = scalar_lea.hbm %s2917_s6, 32 }
 0x605   :  { %p2557_p3 = scmp.ne.s32.totalorder %s2917_s6, %s2556_s19  ;;  %p2560_p4 = scmp.lt.u32.totalorder %s2556_s19, %s2917_s6 }
 0x607   :  { %p2562_p5 = pnand %p2560_p4, %p2557_p3 }
 0x609   :  { %2565 = shalt.err (!%p2562_p5)
}
 0x60a   :  { %2091 = dma.vmem_to_hbm [thread:$0]  %s2089_s15, 32, %s2917_s6, [#allocation4]  }
 0x60b   :  { %2572 = dma.done.wait [#allocation4], 32  }
 0x60c   :  { %2573 = vsyncadd [#allocation4], 4294967264 }
 0x60d   :  { %2095 = vsyncpa [#allocation3], 1 }
 0x60e   :  { %2096 = vsyncpa [#allocation6], 1 }
 0x60f   :  { %2097 = vsyncpa [#allocation9], 1 }
 0x610   :  { %2098 = vsyncpa [#allocation4], 1 }

</bundles_post_ra>
